<compile_context>
chip_gen: v7x
topology: tpu7x:2x2x1
jax: 0.10.0
libtpu: 0.0.40
codegen_flags: <defaults>
</compile_context>

<pallas_src>
import functools

import jax
import jax.numpy as jnp
import numpy as np
from jax.experimental import pallas as pl
from jax.experimental.pallas import tpu as pltpu


def _round_up(n, m):
    return ((n + m - 1) // m) * m


def qnet_kernel(xa_ref, w1_ref, b1_ref, wc_ref, bc_ref, wo_ref, bo_ref, out_ref):
    """One batch tile, batch on the lane axis.

    xa_ref : (9, TB)    [x | a] features on sublanes, batch on lanes
    w1_ref : (128, 9)   block-diagonal fused fc_s/fc_a weight (transposed)
    b1_ref : (128, 1)   [bs | ba] (f32)
    wc_ref : (32, 128)  fc_cat weight (transposed)
    bc_ref : (32, 1)    fc_cat bias (f32)
    wo_ref : (32, 1)    fc_out weight as a column (f32, stays on VPU)
    bo_ref : (1,)       fc_out bias (SMEM scalar)
    out_ref: (1, TB)    q-values, lane-dense
    """
    # Layer 1 (fused fc_s + fc_a): (128,9)@(9,TB) on the MXU, f32 accumulate.
    h = jnp.maximum(
        jnp.dot(w1_ref[...], xa_ref[...], preferred_element_type=jnp.float32)
        + b1_ref[...], 0.0)                                   # (128, TB) f32

    # fc_cat: torch.cat([h1, h2]) is implicit in the 128-row layout.
    q = jnp.maximum(
        jnp.dot(wc_ref[...], h.astype(wc_ref.dtype),
                preferred_element_type=jnp.float32)
        + bc_ref[...], 0.0)                                   # (32, TB) f32

    # fc_out (N=1): VPU multiply + sublane reduce -> lane-dense (1, TB) row.
    out_ref[...] = (jnp.sum(q * wo_ref[...], axis=0, keepdims=True)
                    + bo_ref[0]).astype(out_ref.dtype)


def pack_qnet_params(params, compute_dtype=jnp.bfloat16):
    """Pack per-layer params into the fused, transposed kernel layout.

    compute_dtype applies to MXU operands only; biases / fc_out row / the
    accumulator path stay float32 (v5e has no bf16 VPU/EUP).
    """
    ws, bs, wa, ba, wc, bc, wo, bo = params        # weights stored (in, out)
    w1t = jnp.zeros((128, 9), jnp.float32)
    w1t = w1t.at[:64, :8].set(ws.T)                # fc_s block (rows 0..63)
    w1t = w1t.at[64:, 8:].set(wa.T)                # fc_a block (rows 64..127, col 8)
    b1 = jnp.concatenate([bs, ba]).reshape(128, 1).astype(jnp.float32)
    return (
        w1t.astype(compute_dtype),                 # (128, 9)
        b1,                                        # (128, 1) f32
        wc.T.astype(compute_dtype),                # (32, 128)
        bc.reshape(32, 1).astype(jnp.float32),     # (32, 1)  f32
        wo.reshape(32, 1).astype(jnp.float32),     # (32, 1)  f32
        bo.reshape(1).astype(jnp.float32),         # (1,)     SMEM scalar
    )


def _pick_tile(batch, block_b):
    """Lane tile (multiple of 128). Prefer >= 2 grid steps when the batch
    allows it so the 'parallel' axis splits across v7x's two TensorCores and
    the HBM<->VMEM pipeline has something to overlap."""
    b128 = _round_up(batch, 128)
    tb = min(block_b, b128)
    if tb == b128 and b128 >= 256:
        tb = _round_up((b128 + 1) // 2, 128)
    return tb


@functools.partial(jax.jit, static_argnames=("block_b",))
def qnet_forward(x, a, packed, block_b=4096):
    """x: (B, 8), a: (B, 1) any real/int dtype.  Returns (B, 1) float32."""
    w1t, b1, wct, bc, wo, bo = packed
    compute_dtype = w1t.dtype

    B = x.shape[0]
    # a.to(torch.float) + implicit concat; transpose so batch lands on lanes.
    xaT = jnp.concatenate(
        [x.astype(jnp.float32).T, a.astype(jnp.float32).reshape(1, B)],
        axis=0).astype(compute_dtype)                          # (9, B)

    TB = _pick_tile(B, block_b)
    Bp = _round_up(B, TB)
    if Bp != B:
        xaT = jnp.pad(xaT, ((0, 0), (0, Bp - B)))

    out = pl.pallas_call(
        qnet_kernel,
        out_shape=jax.ShapeDtypeStruct((1, Bp), jnp.float32),
        grid=(Bp // TB,),
        in_specs=[
            pl.BlockSpec((9, TB), lambda i: (0, i)),            # xaT (batch-tiled)
            pl.BlockSpec((128, 9), lambda i: (0, 0)),           # W1T (resident)
            pl.BlockSpec((128, 1), lambda i: (0, 0)),           # b1
            pl.BlockSpec((32, 128), lambda i: (0, 0)),          # WcT
            pl.BlockSpec((32, 1), lambda i: (0, 0)),            # bc
            pl.BlockSpec((32, 1), lambda i: (0, 0)),            # wo column
            pl.BlockSpec(memory_space=pltpu.MemorySpace.SMEM),  # bo scalar
        ],
        out_specs=pl.BlockSpec((1, TB), lambda i: (0, i)),      # lane-dense out
        compiler_params=pltpu.CompilerParams(
            dimension_semantics=("parallel",)),
    )(xaT, w1t, b1, wct, bc, wo, bo)

    return out[0, :B].reshape(B, 1)


def init_params(key):
    """Deterministic init mimicking PyTorch nn.Linear default (uniform +-1/sqrt(fan_in)).
    Weights stored transposed: (in_features, out_features)."""
    def linear(key, fan_in, fan_out):
        kw, kb = jax.random.split(key)
        bound = 1.0 / np.sqrt(fan_in)
        w = jax.random.uniform(kw, (fan_in, fan_out), jnp.float32, -bound, bound)
        b = jax.random.uniform(kb, (fan_out,), jnp.float32, -bound, bound)
        return w, b

    k1, k2, k3, k4 = jax.random.split(key, 4)
    ws, bs = linear(k1, 8, 64)     # fc_s
    wa, ba = linear(k2, 1, 64)     # fc_a
    wc, bc = linear(k3, 128, 32)   # fc_cat
    wo, bo = linear(k4, 32, 1)     # fc_out
    return ws, bs, wa, ba, wc, bc, wo, bo


def qnet_reference(x, a, params):
    """Pure-JAX reference matching the PyTorch forward."""
    ws, bs, wa, ba, wc, bc, wo, bo = params
    a = a.astype(jnp.float32)
    h1 = jax.nn.relu(x @ ws + bs)
    h2 = jax.nn.relu(a @ wa + ba)
    cat = jnp.concatenate([h1, h2], axis=1)
    q = jax.nn.relu(cat @ wc + bc)
    return q @ wo + bo


if __name__ == "__main__":
    key = jax.random.PRNGKey(0)
    kp, kx, ka = jax.random.split(key, 3)

    params = init_params(kp)

    # Small but non-trivial batch: not a multiple of 128, exercises lane
    # padding and a 2-step pipelined "parallel" grid (TB picked as 256).
    B = 300
    x = jax.random.normal(kx, (B, 8), jnp.float32)               # state
    a = jax.random.randint(ka, (B, 1), 0, 2).astype(jnp.int32)   # discrete action

    ref = qnet_reference(x, a, params)

    # Exact-math path (f32 MXU operands): tight tolerance.
    out_f32 = qnet_forward(x, a, pack_qnet_params(params, jnp.float32))
    out_f32 = jax.block_until_ready(out_f32)
    np.testing.assert_allclose(np.asarray(out_f32), np.asarray(ref),
                               rtol=1e-5, atol=1e-5)

    # Default bf16 MXU-operand path (recommended on v6e/v7x): looser tolerance
    # vs. the f32 reference (expected bf16 rounding).
    out_bf16 = qnet_forward(x, a, pack_qnet_params(params))
    out_bf16 = jax.block_until_ready(out_bf16)
    np.testing.assert_allclose(np.asarray(out_bf16), np.asarray(ref),
                               rtol=2e-2, atol=5e-2)

    assert out_f32.shape == (B, 1) and out_f32.dtype == jnp.float32
    print("KERNEL_OK")
</pallas_src>

<mosaic_0001>
module attributes {stable_mosaic.version = 11 : i64} {
  func.func @qnet_kernel(%arg0: i32, %arg1: memref<9x256xf32, #tpu.memory_space<vmem>>, %arg2: memref<128x9xf32, #tpu.memory_space<vmem>>, %arg3: memref<128x1xf32, #tpu.memory_space<vmem>>, %arg4: memref<32x128xf32, #tpu.memory_space<vmem>>, %arg5: memref<32x1xf32, #tpu.memory_space<vmem>>, %arg6: memref<32x1xf32, #tpu.memory_space<vmem>>, %arg7: memref<1xf32, #tpu.memory_space<smem>>, %arg8: memref<1x256xf32, #tpu.memory_space<vmem>>) attributes {dimension_semantics = [#tpu.dimension_semantics<parallel>], iteration_bounds = array<i64: 2>, scalar_prefetch = 0 : i64, scratch_operands = 0 : i64, tpu.core_type = #tpu.core_type<tc>, window_params = [{transform_indices = @transform_0, window_bounds = array<i64: 9, 256>}, {pipeline_mode = #tpu.pipeline_mode<synchronous>, transform_indices = @transform_1, window_bounds = array<i64: 128, 9>}, {pipeline_mode = #tpu.pipeline_mode<synchronous>, transform_indices = @transform_2, window_bounds = array<i64: 128, 1>}, {pipeline_mode = #tpu.pipeline_mode<synchronous>, transform_indices = @transform_3, window_bounds = array<i64: 32, 128>}, {pipeline_mode = #tpu.pipeline_mode<synchronous>, transform_indices = @transform_4, window_bounds = array<i64: 32, 1>}, {pipeline_mode = #tpu.pipeline_mode<synchronous>, transform_indices = @transform_5, window_bounds = array<i64: 32, 1>}, {transform_indices = @transform_6, window_bounds = array<i64: 1>}, {transform_indices = @transform_7, window_bounds = array<i64: 1, 256>}]} {
    %c0 = arith.constant 0 : index
    %c0_0 = arith.constant 0 : index
    %0 = vector.load %arg2[%c0, %c0_0] : memref<128x9xf32, #tpu.memory_space<vmem>>, vector<128x9xf32>
    %c0_1 = arith.constant 0 : index
    %c0_2 = arith.constant 0 : index
    %1 = vector.load %arg1[%c0_1, %c0_2] : memref<9x256xf32, #tpu.memory_space<vmem>>, vector<9x256xf32>
    %cst = arith.constant dense<0.000000e+00> : vector<128x256xf32>
    %2 = tpu.matmul %0, %1, %cst {dimension_numbers = #tpu.dot_dimension_numbers<[1], [0], [0], [1], [0, 0, 1, 1], [], []>} : vector<128x9xf32>, vector<9x256xf32>, vector<128x256xf32> -> vector<128x256xf32>
    %c0_3 = arith.constant 0 : index
    %c0_4 = arith.constant 0 : index
    %3 = vector.load %arg3[%c0_3, %c0_4] : memref<128x1xf32, #tpu.memory_space<vmem>>, vector<128x1xf32>
    %4 = vector.broadcast %3 : vector<128x1xf32> to vector<128x256xf32>
    %5 = arith.addf %2, %4 : vector<128x256xf32>
    %cst_5 = arith.constant 0.000000e+00 : f32
    %6 = vector.broadcast %cst_5 : f32 to vector<128x256xf32>
    %7 = arith.maximumf %5, %6 : vector<128x256xf32>
    %c0_6 = arith.constant 0 : index
    %c0_7 = arith.constant 0 : index
    %8 = vector.load %arg4[%c0_6, %c0_7] : memref<32x128xf32, #tpu.memory_space<vmem>>, vector<32x128xf32>
    %cst_8 = arith.constant dense<0.000000e+00> : vector<32x256xf32>
    %9 = tpu.matmul %8, %7, %cst_8 {dimension_numbers = #tpu.dot_dimension_numbers<[1], [0], [0], [1], [0, 0, 1, 1], [], []>} : vector<32x128xf32>, vector<128x256xf32>, vector<32x256xf32> -> vector<32x256xf32>
    %c0_9 = arith.constant 0 : index
    %c0_10 = arith.constant 0 : index
    %10 = vector.load %arg5[%c0_9, %c0_10] : memref<32x1xf32, #tpu.memory_space<vmem>>, vector<32x1xf32>
    %11 = vector.broadcast %10 : vector<32x1xf32> to vector<32x256xf32>
    %12 = arith.addf %9, %11 : vector<32x256xf32>
    %cst_11 = arith.constant 0.000000e+00 : f32
    %13 = vector.broadcast %cst_11 : f32 to vector<32x256xf32>
    %14 = arith.maximumf %12, %13 : vector<32x256xf32>
    %c0_12 = arith.constant 0 : index
    %c0_13 = arith.constant 0 : index
    %15 = vector.load %arg6[%c0_12, %c0_13] : memref<32x1xf32, #tpu.memory_space<vmem>>, vector<32x1xf32>
    %16 = vector.broadcast %15 : vector<32x1xf32> to vector<32x256xf32>
    %17 = arith.mulf %14, %16 : vector<32x256xf32>
    %cst_14 = arith.constant dense<0.000000e+00> : vector<256xf32>
    %18 = vector.multi_reduction <add>, %17, %cst_14 [0] : vector<32x256xf32> to vector<256xf32>
    %19 = vector.shape_cast %18 : vector<256xf32> to vector<1x256xf32>
    %c0_15 = arith.constant 0 : index
    %20 = memref.load %arg7[%c0_15] : memref<1xf32, #tpu.memory_space<smem>>
    %21 = vector.broadcast %20 : f32 to vector<1x256xf32>
    %22 = arith.addf %19, %21 : vector<1x256xf32>
    %c0_16 = arith.constant 0 : index
    %c0_17 = arith.constant 0 : index
    %23 = vector.load %arg8[%c0_16, %c0_17] : memref<1x256xf32, #tpu.memory_space<vmem>>, vector<1x256xf32>
    tpu.vector_store %arg8[%c0_16, %c0_17], %22 {strides = array<i32>} : memref<1x256xf32, #tpu.memory_space<vmem>>, vector<1x256xf32>,
    return
  }
  func.func @transform_0(%arg0: i32) -> (i32, i32) {
    %c0_i32 = arith.constant 0 : i32
    %c0_i32_0 = arith.constant 0 : i32
    return %c0_i32, %arg0 : i32, i32
  }
  func.func @transform_1(%arg0: i32) -> (i32, i32) {
    %c0_i32 = arith.constant 0 : i32
    %c0_i32_0 = arith.constant 0 : i32
    %c0_i32_1 = arith.constant 0 : i32
    return %c0_i32, %c0_i32_0 : i32, i32
  }
  func.func @transform_2(%arg0: i32) -> (i32, i32) {
    %c0_i32 = arith.constant 0 : i32
    %c0_i32_0 = arith.constant 0 : i32
    %c0_i32_1 = arith.constant 0 : i32
    return %c0_i32, %c0_i32_0 : i32, i32
  }
  func.func @transform_3(%arg0: i32) -> (i32, i32) {
    %c0_i32 = arith.constant 0 : i32
    %c0_i32_0 = arith.constant 0 : i32
    %c0_i32_1 = arith.constant 0 : i32
    return %c0_i32, %c0_i32_0 : i32, i32
  }
  func.func @transform_4(%arg0: i32) -> (i32, i32) {
    %c0_i32 = arith.constant 0 : i32
    %c0_i32_0 = arith.constant 0 : i32
    %c0_i32_1 = arith.constant 0 : i32
    return %c0_i32, %c0_i32_0 : i32, i32
  }
  func.func @transform_5(%arg0: i32) -> (i32, i32) {
    %c0_i32 = arith.constant 0 : i32
    %c0_i32_0 = arith.constant 0 : i32
    %c0_i32_1 = arith.constant 0 : i32
    return %c0_i32, %c0_i32_0 : i32, i32
  }
  func.func @transform_6(%arg0: i32) -> i32 {
    %c0_i32 = arith.constant 0 : i32
    %c0_i32_0 = arith.constant 0 : i32
    return %c0_i32 : i32
  }
  func.func @transform_7(%arg0: i32) -> (i32, i32) {
    %c0_i32 = arith.constant 0 : i32
    %c0_i32_0 = arith.constant 0 : i32
    return %c0_i32, %arg0 : i32, i32
  }
}

</mosaic_0001>

<bundles_post_ra>
// kernel: qnet_forward.1
= control target key start
LH: loop header
LB: loop body
LE: loop exit
PB: predicated region body
PF: predicated region fallthrough
CT: control target
= control target key end

     0   :  { %s1319_s0 = inlined_call_operand.vmem [shape: f32[9,512], index: 0, kind: input, shape index: {}]   ;;  %s1320_s1 = inlined_call_operand.vmem [shape: f32[128,9], index: 1, kind: input, shape index: {}]   ;;  %s1321_s2 = inlined_call_operand.vmem [shape: f32[128,1], index: 2, kind: input, shape index: {}]   ;;  %s1322_s3 = inlined_call_operand.vmem [shape: f32[32,128], index: 3, kind: input, shape index: {}]   ;;  %s1323_s4 = inlined_call_operand.vmem [shape: f32[32,1], index: 4, kind: input, shape index: {}]   ;;  %s1324_s5 = inlined_call_operand.vmem [shape: f32[32,1], index: 5, kind: input, shape index: {}]   ;;  %s1325_s6 = inlined_call_operand.<no memory space> [shape: f32[1], index: 6, kind: input, shape index: {}]   ;;  %s1326_s7 = inlined_call_operand.vmem [shape: f32[1,512], index: 7, kind: output, shape index: {}]  }
   0x1   :  { %12 = sst [smem:[#allocation2]] %s1325_s6 }
   0x2   :  { %s1099_s26 = smov 0   ;;  %s1101_s27 = smov 0  }
   0x3   :  { %s1103_s28 = smov 0  }
   0x4 LB: > { %s929_s6 = sadd.s32 4294967295, %s1050_s28   ;;  %s1116_s29 = sadd.s32 1, %s1050_s28   ;;  %s1050_s28 = sphi %s1103_s28, %s1329_s28   ;;  %s1046_s27 = sphi %s1101_s27, %s1328_s27   ;;  %s1042_s26 = sphi %s1099_s26, %s1327_s26  }
   0x5   : > { %s22_s30 = ssub.s32 %s1050_s28, %s1116_s29  ;;  %s25_s8 = sadd.s32 1, %s1046_s27 }
   0x6   : > { %p23_p0 = scmp.eq.s32.totalorder %s22_s30, 0  ;;  %p32_p1 = scmp.ne.s32.totalorder %s1046_s27, %s1042_s26 }
   0x7   : > { %p33_p2 = scmp.eq.s32.totalorder %s1050_s28, 0  ;;  %p932_p4 = scmp.ge.s32.totalorder %s1050_s28, 2 }
   0x8   : > { %s1125_s9 = scalar_select %p23_p0, %s1046_s27, %s25_s8  }
   0x9   : > { %p34_p3 = por %p33_p2, %p32_p1  ;;  %228 = sbr.rel (%p932_p4) target bundleno = 23 (0x17), region = 40 }
  0x10   : > { %231 = sbr.rel (!%p34_p3) target bundleno = 23 (0x17), region = 44  ;;  %s233_s10 = sand.u32 (%p34_p3), 1, %s1046_s27  }
  0x11   : > { %s959_s11 = sshll.u32 (%p34_p3), %s1050_s28, 4  ;;  %s933_s12 = sshll.u32 (%p34_p3), %s233_s10, 5 }
  0x12   : > { %s238_s15 = scalar_lea.vmem (%p34_p3), %s1319_s0, %s959_s11  ;;  %s235_s16 = scalar_lea.vmem (%p34_p3), [#allocation3], %s933_s12 }
  0x13   : > { %v251_v0 = vld [vmem:[%s238_s15] sm:$0xff] (%p34_p3)  ;;  %v253_v1 = vld [vmem:[%s238_s15 + $0x8] sm:$0xff] (%p34_p3) }
  0x14   : > { %v255_v2 = vld [vmem:[%s238_s15 + $0x20] sm:$0xff] (%p34_p3)  ;;  %252 = vst [vmem:[%s235_s16] sm:$0xff] (%p34_p3), %v251_v0  ;;  %254 = vst [vmem:[%s235_s16 + $0x8] sm:$0xff] (%p34_p3), %v253_v1  ;;  %v257_v3 = vld [vmem:[%s238_s15 + $0x28] sm:$0xff] (%p34_p3) }
  0x15   : > { %256 = vst [vmem:[%s235_s16 + $0x10] sm:$0xff] (%p34_p3), %v255_v2  ;;  %258 = vst [vmem:[%s235_s16 + $0x18] sm:$0xff] (%p34_p3), %v257_v3 }
  0x17 PF: > { %p936_p5 = scmp.ge.s32.totalorder %s1050_s28, 1  ;;  %p263_p6 = scmp.lt.s32.totalorder %s1050_s28, 3 }
  0x19   : > { %p264_p7 = pnand %p936_p5, %p263_p6 }
  0x1a   : > { %s270_s17 = sand.u32 (!%p264_p7), 1, %s1042_s26   ;;  %vm471_vm0 = vcmask (!%p264_p7), 1040384   ;;  %v1052_v4 = vmov (!%p264_p7), 0.0   ;;  %vm1053_vm1 = vmmov (!%p264_p7), 1   ;;  %v1054_v5 = vmov (!%p264_p7), 0   ;;  %v306_v12 = vld [vmem:[%s1320_s1] sm:$0xff] (!%p264_p7) }
  0x1b   : > { %267 = sbr.rel (%p264_p7) target bundleno = 573 (0x23d), region = 67  ;;  %s937_s18 = sshll.u32 (!%p264_p7), %s270_s17, 5  ;;  %542 = vmatprep.mubr.f32.mxu0 (!%p264_p7), %v1052_v4  ;;  %763 = vmatprep.mubr.f32.mxu1 (!%p264_p7), %v1052_v4  ;;  %vm961_vm2 = vmpackc.low (!%p264_p7), %vm471_vm0, %vm1053_vm1  ;;  %vm422_vm3 = vcmask (!%p264_p7), 72704   ;;  %v326_v13 = vld [vmem:[%s1321_s2] sm:$0xff] (!%p264_p7)  ;;  %v328_v14 = vld [vmem:[%s1321_s2 + $0x10] sm:$0xff] (!%p264_p7) }
  0x1c   : > { %1026 = vset.pattern.permute.xlu0 (!%p264_p7), %v1054_v5  ;;  %1027 = vset.pattern.permute.xlu1 (!%p264_p7), %v1054_v5  ;;  %s272_s19 = scalar_lea.vmem (!%p264_p7), [#allocation3], %s937_s18  ;;  %v327_v15 = vld [vmem:[%s1321_s2 + $0x8] sm:$0xff] (!%p264_p7)  ;;  %v329_v16 = vld [vmem:[%s1321_s2 + $0x18] sm:$0xff] (!%p264_p7)  ;;  %v330_v18 = vld [vmem:[%s1321_s2 + $0x20] sm:$0xff] (!%p264_p7)  ;;  %s846_s13 = sld [smem:[#allocation2]] (!%p264_p7) }
  0x1d   : > { %v323_v6 = vld [vmem:[%s272_s19 + $0x8] sm:$0xff] (!%p264_p7)  ;;  %v325_v7 = vld [vmem:[%s272_s19 + $0x18] sm:$0x1] (!%p264_p7)  ;;  %v322_v8 = vld [vmem:[%s272_s19] sm:$0xff] (!%p264_p7)  ;;  %344 = vperm.xlu0 (!%p264_p7), %1026, %v326_v13   ;;  %354 = vperm.xlu1 (!%p264_p7), %1027, %v328_v14   ;;  %s938_s14 = sshll.u32 (!%p264_p7), %s929_s6, 1 }
  0x1e   : > { %v960_v9 = vpack.c.bf16 (!%p264_p7), %v325_v7, %v323_v6  ;;  %v324_v10 = vld [vmem:[%s272_s19 + $0x10] sm:$0x1] (!%p264_p7)  ;;  %v307_v17 = vld [vmem:[%s1320_s1 + $0x8] sm:$0xff] (!%p264_p7)  ;;  %v333_v22 = vld [vmem:[%s1321_s2 + $0x38] sm:$0xff] (!%p264_p7)  ;;  %p302_p8 = scmp.lt.s32.totalorder (!%p264_p7), %s938_s14, 3 }
  0x1f   : > { %v963_v11 = vpack.c.bf16 (!%p264_p7), %v324_v10, %v322_v8  ;;  %v331_v19 = vld [vmem:[%s1321_s2 + $0x28] sm:$0xff] (!%p264_p7)  ;;  %v308_v20 = vld [vmem:[%s1320_s1 + $0x10] sm:$0xff] (!%p264_p7)  ;;  %v309_v23 = vld [vmem:[%s1320_s1 + $0x18] sm:$0xff] (!%p264_p7) }
  0x20   : > { %962 = vmatprep.subr.msk.bf16.mxu0 (!%p264_p7), %vm961_vm2, %v960_v9  ;;  %v332_v21 = vld [vmem:[%s1321_s2 + $0x30] sm:$0xff] (!%p264_p7)  ;;  %v334_v24 = vld [vmem:[%s1321_s2 + $0x40] sm:$0xff] (!%p264_p7)  ;;  %v335_v25 = vld [vmem:[%s1321_s2 + $0x48] sm:$0xff] (!%p264_p7) }
  0x21   : > { %965 = vmatpush1.bf16.msk.msra.mxu0 (!%p264_p7), %vm961_vm2, %v963_v11  ;;  %349 = vperm.xlu0 (!%p264_p7), %1026, %v327_v15   ;;  %v310_v26 = vld [vmem:[%s1320_s1 + $0x20] sm:$0xff] (!%p264_p7)  ;;  %v336_v27 = vld [vmem:[%s1321_s2 + $0x50] sm:$0xff] (!%p264_p7)  ;;  %v337_v28 = vld [vmem:[%s1321_s2 + $0x58] sm:$0xff] (!%p264_p7) }
  0x22   : > { %359 = vperm.xlu1 %1027, %v329_v16   ;;  %v311_v29 = vld [vmem:[%s1320_s1 + $0x28] sm:$0xff]  ;;  %v338_v30 = vld [vmem:[%s1321_s2 + $0x60] sm:$0xff]  ;;  %v312_v32 = vld [vmem:[%s1320_s1 + $0x30] sm:$0xff]  ;;  %s1331_s14 = smov (!%p302_p8, %s938_s14), 3 }
  0x23   : > { %v339_v31 = vld [vmem:[%s1321_s2 + $0x68] sm:$0xff]  ;;  %v340_v33 = vld [vmem:[%s1321_s2 + $0x70] sm:$0xff]  ;;  %v341_v34 = vld [vmem:[%s1321_s2 + $0x78] sm:$0xff]  ;;  %s304_s28 = scalar_lea.vmem %s1326_s7, %s1331_s14 }
  0x24   : > { %941 = vmatmul.mubr.msk.f32.vlgmr.msra.gmra.mrb[0].mxu0 %vm422_vm3, %v306_v12  ;;  %v313_v35 = vld [vmem:[%s1320_s1 + $0x38] sm:$0xff]  ;;  %v675_v36 = vld [vmem:[%s1323_s4] sm:$0xff]  ;;  %v676_v37 = vld [vmem:[%s1323_s4 + $0x8] sm:$0xff] }
  0x25   : > { %548 = vmatprep.mubr.f32.mxu0 %v1052_v4  ;;  %364 = vperm.xlu0 %1026, %v330_v18   ;;  %v314_v38 = vld [vmem:[%s1320_s1 + $0x40] sm:$0xff]  ;;  %v677_v39 = vld [vmem:[%s1323_s4 + $0x10] sm:$0xff]  ;;  %v678_v40 = vld [vmem:[%s1323_s4 + $0x18] sm:$0xff] }
  0x26   : > { %369 = vperm.xlu1 %1027, %v331_v19   ;;  %v315_v41 = vld [vmem:[%s1320_s1 + $0x48] sm:$0xff]  ;;  %v796_v42 = vld [vmem:[%s1324_s5] sm:$0xff]  ;;  %v316_v44 = vld [vmem:[%s1320_s1 + $0x50] sm:$0xff] }
  0x27   : > { %v797_v43 = vld [vmem:[%s1324_s5 + $0x8] sm:$0xff]  ;;  %v798_v45 = vld [vmem:[%s1324_s5 + $0x10] sm:$0xff]  ;;  %v799_v46 = vld [vmem:[%s1324_s5 + $0x18] sm:$0xff] }
  0x28   : > { %942 = vmatmul.mubr.msk.f32.gmra.mrb[2].mxu0 %vm422_vm3, %v307_v17  ;;  %v317_v47 = vld [vmem:[%s1320_s1 + $0x58] sm:$0xff]  ;;  %v318_v48 = vld [vmem:[%s1320_s1 + $0x60] sm:$0xff]  ;;  %v319_v49 = vld [vmem:[%s1320_s1 + $0x68] sm:$0xff] }
  0x29   : > { %554 = vmatprep.mubr.f32.mxu0 %v1052_v4  ;;  %374 = vperm.xlu0 %1026, %v332_v21   ;;  %v320_v50 = vld [vmem:[%s1320_s1 + $0x70] sm:$0xff]  ;;  %v321_v51 = vld [vmem:[%s1320_s1 + $0x78] sm:$0xff] }
  0x2a   : > { %379 = vperm.xlu1 %1027, %v333_v22  }
  0x2c   : > { %943 = vmatmul.mubr.msk.f32.gmra.mrb[4].mxu0 %vm422_vm3, %v308_v20 }
  0x2d   : > { %560 = vmatprep.mubr.f32.mxu0 %v1052_v4  ;;  %384 = vperm.xlu0 %1026, %v334_v24  }
  0x2e   : > { %389 = vperm.xlu1 %1027, %v335_v25  }
  0x30   : > { %944 = vmatmul.mubr.msk.f32.gmra.mrb[6].mxu0 %vm422_vm3, %v309_v23 }
  0x31   : > { %566 = vmatprep.mubr.f32.mxu0 %v1052_v4  ;;  %394 = vperm.xlu0 %1026, %v336_v27  }
  0x32   : > { %399 = vperm.xlu1 %1027, %v337_v28  }
  0x34   : > { %945 = vmatmul.mubr.msk.f32.gmra.mrb[8].mxu0 %vm422_vm3, %v310_v26 }
  0x35   : > { %572 = vmatprep.mubr.f32.mxu0 %v1052_v4  ;;  %404 = vperm.xlu0 %1026, %v338_v30  }
  0x36   : > { %409 = vperm.xlu1 %1027, %v339_v31  }
  0x38   : > { %946 = vmatmul.mubr.msk.f32.gmra.mrb[10].mxu0 %vm422_vm3, %v311_v29 }
  0x39   : > { %578 = vmatprep.mubr.f32.mxu0 %v1052_v4  ;;  %414 = vperm.xlu0 %1026, %v340_v33  }
  0x3a   : > { %419 = vperm.xlu1 %1027, %v341_v34  }
  0x3c   : > { %947 = vmatmul.mubr.msk.f32.gmra.mrb[12].mxu0 %vm422_vm3, %v312_v32 }
  0x3d   : > { %584 = vmatprep.mubr.f32.mxu0 %v1052_v4  ;;  %681 = vperm.xlu0 %1026, %v675_v36  }
  0x3e   : > { %686 = vperm.xlu1 %1027, %v676_v37  }
  0x40   : > { %948 = vmatmul.mubr.msk.f32.gmra.mrb[14].mxu0 %vm422_vm3, %v313_v35 }
  0x41   : > { %590 = vmatprep.mubr.f32.mxu0 %v1052_v4  ;;  %691 = vperm.xlu0 %1026, %v677_v39  }
  0x42   : > { %696 = vperm.xlu1 %1027, %v678_v40  }
  0x44   : > { %949 = vmatmul.mubr.msk.f32.gmra.mrb[16].mxu0 %vm422_vm3, %v314_v38 }
  0x45   : > { %596 = vmatprep.mubr.f32.mxu0 %v1052_v4  ;;  %802 = vperm.xlu0 %1026, %v796_v42  }
  0x46   : > { %807 = vperm.xlu1 %1027, %v797_v43  }
  0x48   : > { %950 = vmatmul.mubr.msk.f32.gmra.mrb[18].mxu0 %vm422_vm3, %v315_v41 }
  0x49   : > { %602 = vmatprep.mubr.f32.mxu0 %v1052_v4  ;;  %812 = vperm.xlu0 %1026, %v798_v45  }
  0x4a   : > { %817 = vperm.xlu1 %1027, %v799_v46  }
  0x4c   : > { %951 = vmatmul.mubr.msk.f32.gmra.mrb[20].mxu0 %vm422_vm3, %v316_v44 }
  0x4d   : > { %608 = vmatprep.mubr.f32.mxu0 %v1052_v4 }
  0x50   : > { %952 = vmatmul.mubr.msk.f32.gmra.mrb[22].mxu0 %vm422_vm3, %v317_v47 }
  0x51   : > { %614 = vmatprep.mubr.f32.mxu0 %v1052_v4 }
  0x54   : > { %953 = vmatmul.mubr.msk.f32.gmra.mrb[24].mxu0 %vm422_vm3, %v318_v48 }
  0x55   : > { %620 = vmatprep.mubr.f32.mxu0 %v1052_v4 }
  0x58   : > { %954 = vmatmul.mubr.msk.f32.gmra.mrb[26].mxu0 %vm422_vm3, %v319_v49 }
  0x59   : > { %626 = vmatprep.mubr.f32.mxu0 %v1052_v4 }
  0x5c   : > { %955 = vmatmul.mubr.msk.f32.gmra.mrb[28].mxu0 %vm422_vm3, %v320_v50 }
  0x5d   : > { %632 = vmatprep.mubr.f32.mxu0 %v1052_v4 }
  0x60   : > { %956 = vmatmul.mubr.msk.f32.gmra.mrb[30].mxu0 %vm422_vm3, %v321_v51 }
  0x9c   : > { %v345_v52 = vpop.permute.xlu0 %344  ;;  %v355_v61 = vpop.permute.xlu1 %354 }
  0xa0   : > { %v350_v56 = vpop.permute.xlu0 %349 }
  0xa1   : > { %v360_v9 = vpop.permute.xlu1 %359 }
  0xa4   : > { %v365_v22 = vpop.permute.xlu0 %364 }
  0xa5   : > { %v370_v25 = vpop.permute.xlu1 %369 }
  0xa8   : > { %v375_v38 = vpop.permute.xlu0 %374 }
  0xa9   : > { %v380_v41 = vpop.permute.xlu1 %379 }
  0xf7   : > { %v544_v53 = vpop.f32.mrb[0].mxu0 }
  0xf8   : > { %v546_v54 = vpop.f32.mrb[1].mxu0  ;;  %v545_v55 = vadd.f32 %v544_v53, %v345_v52 }
  0xf9   : > { %v547_v57 = vadd.f32 %v546_v54, %v345_v52  ;;  %v385_v54 = vpop.permute.xlu0 %384 }
  0xfa   : > { %v639_v63 = vmax.f32 %v545_v55, 0.0 }
  0xfb   : > { %v550_v58 = vpop.f32.mrb[2].mxu0  ;;  %v640_v1 = vmax.f32 %v547_v57, 0.0  ;;  %v390_v57 = vpop.permute.xlu1 %389 }
  0xfc   : > { %v551_v59 = vadd.f32 %v550_v58, %v350_v56  ;;  %v552_v60 = vpop.f32.mrb[3].mxu0 }
  0xfd   : > { %v553_v62 = vadd.f32 %v552_v60, %v350_v56 }
  0xfe   : > { %v641_v0 = vmax.f32 %v551_v59, 0.0 }
  0xff   : > { %v642_v2 = vmax.f32 %v553_v62, 0.0  ;;  %v556_v3 = vpop.f32.mrb[4].mxu0 }
 0x100   : > { %v558_v5 = vpop.f32.mrb[5].mxu0  ;;  %v968_v6 = vpack.c.bf16 %v641_v0, %v639_v63  ;;  %v557_v8 = vadd.f32 %v556_v3, %v355_v61 }
 0x101   : > { %v966_v7 = vpack.c.bf16 %v642_v2, %v640_v1  ;;  %v559_v10 = vadd.f32 %v558_v5, %v355_v61 }
 0x102   : > { %v643_v15 = vmax.f32 %v557_v8, 0.0 }
 0x103   : > { %v562_v11 = vpop.f32.mrb[6].mxu0  ;;  %967 = vmatprep.subr.bf16.mxu1 %v966_v7  ;;  %v644_v17 = vmax.f32 %v559_v10, 0.0  ;;  %v395_v7 = vpop.permute.xlu0 %394 }
 0x104   : > { %v563_v12 = vadd.f32 %v562_v11, %v360_v9  ;;  %v564_v13 = vpop.f32.mrb[7].mxu0  ;;  %969 = vmatpush1.bf16.msra.mxu1 %v968_v6  ;;  %v400_v10 = vpop.permute.xlu1 %399 }
 0x105   : > { %v565_v14 = vadd.f32 %v564_v13, %v360_v9 }
 0x106   : > { %v645_v16 = vmax.f32 %v563_v12, 0.0 }
 0x107   : > { %v646_v18 = vmax.f32 %v565_v14, 0.0  ;;  %v568_v19 = vpop.f32.mrb[8].mxu0 }
 0x108   : > { %v972_v20 = vpack.c.bf16 %v645_v16, %v643_v15  ;;  %v570_v21 = vpop.f32.mrb[9].mxu0  ;;  %v569_v24 = vadd.f32 %v568_v19, %v365_v22 }
 0x109   : > { %v970_v23 = vpack.c.bf16 %v646_v18, %v644_v17  ;;  %v571_v26 = vadd.f32 %v570_v21, %v365_v22 }
 0x10a   : > { %v647_v31 = vmax.f32 %v569_v24, 0.0 }
 0x10b   : > { %v574_v27 = vpop.f32.mrb[10].mxu0  ;;  %971 = vmatprep.subr.bf16.mxu1 %v970_v23  ;;  %v648_v33 = vmax.f32 %v571_v26, 0.0  ;;  %v405_v23 = vpop.permute.xlu0 %404 }
 0x10c   : > { %v575_v28 = vadd.f32 %v574_v27, %v370_v25  ;;  %v576_v29 = vpop.f32.mrb[11].mxu0  ;;  %973 = vmatpush1.bf16.msra.mxu1 %v972_v20  ;;  %v410_v26 = vpop.permute.xlu1 %409 }
 0x10d   : > { %v577_v30 = vadd.f32 %v576_v29, %v370_v25 }
 0x10e   : > { %v649_v32 = vmax.f32 %v575_v28, 0.0 }
 0x10f   : > { %v650_v34 = vmax.f32 %v577_v30, 0.0  ;;  %v580_v35 = vpop.f32.mrb[12].mxu0 }
 0x110   : > { %v976_v36 = vpack.c.bf16 %v649_v32, %v647_v31  ;;  %v582_v37 = vpop.f32.mrb[13].mxu0  ;;  %v581_v40 = vadd.f32 %v580_v35, %v375_v38 }
 0x111   : > { %v974_v39 = vpack.c.bf16 %v650_v34, %v648_v33  ;;  %v583_v42 = vadd.f32 %v582_v37, %v375_v38 }
 0x112   : > { %v651_v47 = vmax.f32 %v581_v40, 0.0 }
 0x113   : > { %v586_v43 = vpop.f32.mrb[14].mxu0  ;;  %975 = vmatprep.subr.bf16.mxu1 %v974_v39  ;;  %v652_v49 = vmax.f32 %v583_v42, 0.0  ;;  %v415_v39 = vpop.permute.xlu0 %414 }
 0x114   : > { %v587_v44 = vadd.f32 %v586_v43, %v380_v41  ;;  %v588_v45 = vpop.f32.mrb[15].mxu0  ;;  %977 = vmatpush1.bf16.msra.mxu1 %v976_v36  ;;  %v420_v42 = vpop.permute.xlu1 %419 }
 0x115   : > { %v589_v46 = vadd.f32 %v588_v45, %v380_v41 }
 0x116   : > { %v653_v48 = vmax.f32 %v587_v44, 0.0 }
 0x117   : > { %v654_v50 = vmax.f32 %v589_v46, 0.0  ;;  %v592_v51 = vpop.f32.mrb[16].mxu0 }
 0x118   : > { %v980_v52 = vpack.c.bf16 %v653_v48, %v651_v47  ;;  %v594_v53 = vpop.f32.mrb[17].mxu0  ;;  %v593_v56 = vadd.f32 %v592_v51, %v385_v54 }
 0x119   : > { %v978_v55 = vpack.c.bf16 %v654_v50, %v652_v49  ;;  %v595_v58 = vadd.f32 %v594_v53, %v385_v54  ;;  %v671_v54 = vld [vmem:[%s1322_s3] sm:$0xff] }
 0x11a   : > { %v655_v63 = vmax.f32 %v593_v56, 0.0  ;;  %v673_v56 = vld [vmem:[%s1322_s3 + $0x10] sm:$0xff] }
 0x11b   : > { %v598_v59 = vpop.f32.mrb[18].mxu0  ;;  %979 = vmatprep.subr.bf16.mxu1 %v978_v55  ;;  %v656_v1 = vmax.f32 %v595_v58, 0.0  ;;  %v672_v55 = vld [vmem:[%s1322_s3 + $0x8] sm:$0xff]  ;;  %v682_v58 = vpop.permute.xlu0 %681 }
 0x11c   : > { %v599_v60 = vadd.f32 %v598_v59, %v390_v57  ;;  %v600_v61 = vpop.f32.mrb[19].mxu0  ;;  %981 = vmatpush1.bf16.msra.mxu1 %v980_v52  ;;  %v687_v59 = vpop.permute.xlu1 %686 }
 0x11d   : > { %v601_v62 = vadd.f32 %v600_v61, %v390_v57  ;;  %v674_v57 = vld [vmem:[%s1322_s3 + $0x18] sm:$0xff] }
 0x11e   : > { %v657_v0 = vmax.f32 %v599_v60, 0.0 }
 0x11f   : > { %v658_v2 = vmax.f32 %v601_v62, 0.0  ;;  %v604_v3 = vpop.f32.mrb[20].mxu0  ;;  %v692_v60 = vpop.permute.xlu0 %691 }
 0x120   : > { %v984_v5 = vpack.c.bf16 %v657_v0, %v655_v63  ;;  %v606_v6 = vpop.f32.mrb[21].mxu0  ;;  %v605_v9 = vadd.f32 %v604_v3, %v395_v7  ;;  %v697_v0 = vpop.permute.xlu1 %696 }
 0x121   : > { %v982_v8 = vpack.c.bf16 %v658_v2, %v656_v1  ;;  %v607_v11 = vadd.f32 %v606_v6, %v395_v7 }
 0x122   : > { %v659_v16 = vmax.f32 %v605_v9, 0.0 }
 0x123   : > { %v610_v12 = vpop.f32.mrb[22].mxu0  ;;  %983 = vmatprep.subr.bf16.mxu1 %v982_v8  ;;  %v660_v18 = vmax.f32 %v607_v11, 0.0  ;;  %v803_v7 = vpop.permute.xlu0 %802 }
 0x124   : > { %v611_v13 = vadd.f32 %v610_v12, %v400_v10  ;;  %v612_v14 = vpop.f32.mrb[23].mxu0  ;;  %985 = vmatpush1.bf16.msra.mxu1 %v984_v5 }
 0x125   : > { %v613_v15 = vadd.f32 %v612_v14, %v400_v10  ;;  %v808_v10 = vpop.permute.xlu1 %807 }
 0x126   : > { %v661_v17 = vmax.f32 %v611_v13, 0.0 }
 0x127   : > { %v662_v19 = vmax.f32 %v613_v15, 0.0  ;;  %v616_v20 = vpop.f32.mrb[24].mxu0 }
 0x128   : > { %v988_v21 = vpack.c.bf16 %v661_v17, %v659_v16  ;;  %v618_v22 = vpop.f32.mrb[25].mxu0  ;;  %v617_v25 = vadd.f32 %v616_v20, %v405_v23 }
 0x129   : > { %v986_v24 = vpack.c.bf16 %v662_v19, %v660_v18  ;;  %v619_v27 = vadd.f32 %v618_v22, %v405_v23  ;;  %v813_v22 = vpop.permute.xlu0 %812 }
 0x12a   : > { %v663_v32 = vmax.f32 %v617_v25, 0.0 }
 0x12b   : > { %v622_v28 = vpop.f32.mrb[26].mxu0  ;;  %987 = vmatprep.subr.bf16.mxu1 %v986_v24  ;;  %v664_v34 = vmax.f32 %v619_v27, 0.0 }
 0x12c   : > { %v623_v29 = vadd.f32 %v622_v28, %v410_v26  ;;  %v624_v30 = vpop.f32.mrb[27].mxu0  ;;  %989 = vmatpush1.bf16.msra.mxu1 %v988_v21 }
 0x12d   : > { %v625_v31 = vadd.f32 %v624_v30, %v410_v26 }
 0x12e   : > { %v665_v33 = vmax.f32 %v623_v29, 0.0 }
 0x12f   : > { %v666_v35 = vmax.f32 %v625_v31, 0.0  ;;  %v628_v36 = vpop.f32.mrb[28].mxu0 }
 0x130   : > { %v992_v37 = vpack.c.bf16 %v665_v33, %v663_v32  ;;  %v630_v38 = vpop.f32.mrb[29].mxu0  ;;  %v629_v41 = vadd.f32 %v628_v36, %v415_v39  ;;  %v818_v33 = vpop.permute.xlu1 %817 }
 0x131   : > { %v990_v40 = vpack.c.bf16 %v666_v35, %v664_v34  ;;  %v631_v43 = vadd.f32 %v630_v38, %v415_v39 }
 0x132   : > { %v667_v48 = vmax.f32 %v629_v41, 0.0 }
 0x133   : > { %v634_v44 = vpop.f32.mrb[30].mxu0  ;;  %991 = vmatprep.subr.bf16.mxu1 %v990_v40  ;;  %v668_v50 = vmax.f32 %v631_v43, 0.0 }
 0x134   : > { %v635_v45 = vadd.f32 %v634_v44, %v420_v42  ;;  %v636_v46 = vpop.f32.mrb[31].mxu0  ;;  %993 = vmatpush1.bf16.msra.mxu1 %v992_v37 }
 0x135   : > { %v637_v47 = vadd.f32 %v636_v46, %v420_v42  ;;  %v1055_v46 = vmov 1966171168  }
 0x136   : > { %v669_v49 = vmax.f32 %v635_v45, 0.0 }
 0x137   : > { %v670_v51 = vmax.f32 %v637_v47, 0.0  ;;  %v854_v47 = vunpack.c.l.s4 %v1055_v46 }
 0x138   : > { %v996_v52 = vpack.c.bf16 %v669_v49, %v667_v48  ;;  %v856_v48 = vlaneseq }
 0x139   : > { %v994_v53 = vpack.c.bf16 %v670_v51, %v668_v50 }
 0x13a   : > { %vm870_vm4 = vcmp.lt.s32.totalorder %v856_v48, 256 }
 0x13b   : > { %995 = vmatprep.subr.bf16.mxu1 %v994_v53 }
 0x13c   : > { %997 = vmatpush1.bf16.msra.mxu1 %v996_v52  ;;  %v847_v52 = vstv %s846_s13 }
 0x13f   : > { %764 = vmatmul.mubr.f32.vlgmr.msra.gmra.mrb[0].mxu1 %v671_v54  ;;  %v855_v54 = vunpack.c.0.s8 %v854_v47 }
 0x140   : > { %769 = vmatprep.mubr.f32.mxu1 %v1052_v4 }
 0x143   : > { %770 = vmatmul.mubr.f32.gmra.mrb[2].mxu1 %v672_v55  ;;  %v857_v55 = vshrl.u32 %v856_v48, 7 }
 0x144   : > { %775 = vmatprep.mubr.f32.mxu1 %v1052_v4 }
 0x147   : > { %776 = vmatmul.mubr.f32.gmra.mrb[4].mxu1 %v673_v56 }
 0x148   : > { %781 = vmatprep.mubr.f32.mxu1 %v1052_v4 }
 0x14b   : > { %782 = vmatmul.mubr.f32.gmra.mrb[6].mxu1 %v674_v57 }
 0x212   : > { %v765_v61 = vpop.f32.mrb[0].mxu1 }
 0x213   : > { %v766_v62 = vadd.f32 %v765_v61, %v682_v58  ;;  %v767_v63 = vpop.f32.mrb[1].mxu1 }
 0x214   : > { %v768_v1 = vadd.f32 %v767_v63, %v682_v58 }
 0x215   : > { %v788_v3 = vmax.f32 %v766_v62, 0.0 }
 0x216   : > { %v771_v2 = vpop.f32.mrb[2].mxu1  ;;  %v789_v8 = vmax.f32 %v768_v1, 0.0 }
 0x217   : > { %v772_v5 = vadd.f32 %v771_v2, %v687_v59  ;;  %v773_v6 = vpop.f32.mrb[3].mxu1  ;;  %v820_v13 = vmul.f32 %v803_v7, %v788_v3 }
 0x218   : > { %v774_v4 = vadd.f32 %v773_v6, %v687_v59  ;;  %v821_v17 = vmul.f32 %v803_v7, %v789_v8 }
 0x219   : > { %v790_v9 = vmax.f32 %v772_v5, 0.0 }
 0x21a   : > { %v791_v11 = vmax.f32 %v774_v4, 0.0  ;;  %v777_v12 = vpop.f32.mrb[4].mxu1 }
 0x21b   : > { %v822_v14 = vmul.f32 %v808_v10, %v790_v9  ;;  %v778_v15 = vadd.f32 %v777_v12, %v692_v60  ;;  %v779_v16 = vpop.f32.mrb[5].mxu1 }
 0x21c   : > { %v823_v18 = vmul.f32 %v808_v10, %v791_v11  ;;  %v780_v19 = vadd.f32 %v779_v16, %v692_v60  ;;  %v858_v60 = vsub.s32 %v855_v54, %v857_v55 }
 0x21d   : > { %v828_v20 = vadd.f32 %v822_v14, %v820_v13  ;;  %v792_v21 = vmax.f32 %v778_v15, 0.0 }
 0x21e   : > { %v837_v23 = vadd.f32 %v823_v18, %v821_v17  ;;  %v793_v24 = vmax.f32 %v780_v19, 0.0  ;;  %v783_v25 = vpop.f32.mrb[6].mxu1 }
 0x21f   : > { %v824_v26 = vmul.f32 %v813_v22, %v792_v21  ;;  %v784_v27 = vadd.f32 %v783_v25, %v697_v0  ;;  %v785_v28 = vpop.f32.mrb[7].mxu1 }
 0x220   : > { %v825_v29 = vmul.f32 %v813_v22, %v793_v24  ;;  %v786_v30 = vadd.f32 %v785_v28, %v697_v0 }
 0x221   : > { %v829_v31 = vadd.f32 %v828_v20, %v824_v26  ;;  %v794_v32 = vmax.f32 %v784_v27, 0.0 }
 0x222   : > { %v838_v34 = vadd.f32 %v837_v23, %v825_v29  ;;  %v795_v35 = vmax.f32 %v786_v30, 0.0 }
 0x223   : > { %v826_v36 = vmul.f32 %v818_v33, %v794_v32 }
 0x224   : > { %v827_v37 = vmul.f32 %v818_v33, %v795_v35 }
 0x225   : > { %v830_v38 = vadd.f32 %v829_v31, %v826_v36 }
 0x226   : > { %v839_v39 = vadd.f32 %v838_v34, %v827_v37 }
 0x227   : > { %v831_v40 = vrot.slane %v830_v38, 4 }
 0x228   : > { %v840_v41 = vrot.slane %v839_v39, 4 }
 0x229   : > { %v832_v42 = vadd.f32 %v831_v40, %v830_v38 }
 0x22a   : > { %v841_v43 = vadd.f32 %v840_v41, %v839_v39 }
 0x22b   : > { %v833_v44 = vrot.slane %v832_v42, 2 }
 0x22c   : > { %v842_v45 = vrot.slane %v841_v43, 2 }
 0x22d   : > { %v834_v49 = vadd.f32 %v833_v44, %v832_v42 }
 0x22e   : > { %v843_v50 = vadd.f32 %v842_v45, %v841_v43 }
 0x22f   : > { %v835_v51 = vrot.slane %v834_v49, 1 }
 0x230   : > { %v844_v53 = vrot.slane %v843_v50, 1 }
 0x231   : > { %v836_v56 = vadd.f32 %v835_v51, %v834_v49 }
 0x232   : > { %v845_v57 = vadd.f32 %v844_v53, %v843_v50 }
 0x233   : > { %v848_v58 = vadd.f32 %v847_v52, %v836_v56 }
 0x234   : > { %v849_v59 = vadd.f32 %v847_v52, %v845_v57 }
 0x236   : > { %v852_v61 = vcombine.low %v848_v58, %v849_v59 }
 0x238   : > { %v859_v62 = vrot.slane %v852_v61, %v858_v60 }
 0x23a   : > { %v866_v63 = vrot.slane %v859_v62, %v858_v60 }
 0x23c   : > { %872 = vst.msk [vmem:[%s304_s28] sm:$0x3] %vm870_vm4, %v866_v63 }
 0x23d PF: > { %p15_p9 = scmp.ge.s32.totalorder %s1116_s29, 4   ;;  %s1327_s26 = smov %s1046_s27 }
 0x23e   : > { %s1328_s27 = smov %s1125_s9  ;;  %s1329_s28 = smov %s1116_s29 }
 0x23f   :  { %17 = sbr.rel (!%p15_p9) target bundleno = 4 (0x4), region = 106 }

</bundles_post_ra>
